<compile_context>
chip_gen: v7x
topology: tpu7x:2x2x1
jax: 0.10.0
libtpu: 0.0.40
codegen_flags: <defaults>
</compile_context>

<pallas_src>
import jax
import jax.numpy as jnp
from jax.experimental import pallas as pl
from jax.experimental.pallas import tpu as pltpu


def _modrelu_kernel(x_ref, b_ref, o_ref):
    # x_ref / o_ref: (TILE_N, 2, TILE_C, TILE_HW) VMEM tiles; b_ref: (TILE_C, 1).
    real = x_ref[:, 0]                                   # (TILE_N, TILE_C, TILE_HW)
    imag = x_ref[:, 1]
    mag = jnp.sqrt(real * real + imag * imag + 1e-5)
    inv = pl.reciprocal(mag + 1e-5, approx=False)        # keep module's 2nd eps
    scale = jnp.maximum(mag - b_ref[...], 0.0) * inv
    o_ref[:, 0] = real * scale                           # lane-dense stores
    o_ref[:, 1] = imag * scale


def _round_up(a, m):
    return (a + m - 1) // m * m


def _largest_divisor(total, cap):
    """Largest d <= cap that divides total (>= 1)."""
    cap = max(1, min(total, cap))
    for d in range(cap, 0, -1):
        if total % d == 0:
            return d
    return 1


def _largest_aligned_divisor(total, unit, cap):
    """Largest multiple of `unit` that divides `total` and is <= cap (0 if none)."""
    best = 0
    d = unit
    limit = min(total, cap)
    while d <= limit:
        if total % d == 0:
            best = d
        d += unit
    return best


def modrelu(x_nchw, bias):
    """ModReLU: x (N, 2*C, H, W) float, bias (C,) -> (N, 2*C, H, W)."""
    n, c2, h, w = x_nchw.shape
    c = c2 // 2
    assert c2 == 2 * c and bias.shape == (c,), "bias must match half the channels"
    hw = h * w
    itemsize = jnp.dtype(x_nchw.dtype).itemsize

    # ---- generation-aware VMEM / block-size budget --------------------------
    try:
        vmem_cap = int(getattr(pltpu.get_tpu_info(), "vmem_capacity_bytes"))
    except Exception:  # query unavailable: assume the smallest (v7x, 64 MiB)
        vmem_cap = 64 * 1024 * 1024
    vmem_limit = max(32 * 1024 * 1024, min(vmem_cap * 3 // 5, 100 * 1024 * 1024))
    # Double-buffered input + output blocks -> keep one block well under 1/8.
    target_block_bytes = min(4 * 1024 * 1024, vmem_limit // 8)

    c_pad = _round_up(c, 8)  # sublane padding: what a block really costs in VMEM

    def block_bytes(tn, tc, thw):
        return tn * 2 * _round_up(tc, 8) * thw * itemsize

    # ---- lane-axis tile: 128-multiple divisor of hw => no pad, no slice -----
    if hw % 128 == 0:
        cap_thw = max(128, target_block_bytes // (2 * c_pad * itemsize))
        tile_hw = _largest_aligned_divisor(hw, 128, cap_thw)
    else:
        # Not a 128 multiple: use the full (untiled) spatial extent so blocks
        # stay lane-dense without any wrapper padding.
        # TODO(synk): for huge non-128-multiple H*W, a masked ragged last tile
        # would bound the block size better.
        tile_hw = hw

    # ---- channel tile (only needed for very large C) ------------------------
    tile_c = c
    if block_bytes(1, c, tile_hw) > target_block_bytes and c % 8 == 0:
        cap_tc = max(8, target_block_bytes // (2 * tile_hw * itemsize))
        tc = _largest_aligned_divisor(c, 8, cap_tc)
        if tc:
            tile_c = tc

    # ---- fold batch into the block to amortize per-grid-step overhead -------
    cap_tn = max(1, target_block_bytes // max(1, block_bytes(1, tile_c, tile_hw)))
    tile_n = _largest_divisor(n, cap_tn)

    # Keep >= 2 grid steps when possible so both v7x TensorCores get work.
    def grid_steps():
        return (n // tile_n) * (c // tile_c) * (hw // tile_hw)

    if grid_steps() < 2:
        if n >= 2:
            tile_n = _largest_divisor(n, n // 2)
        elif tile_hw == hw and hw % 256 == 0:
            tile_hw = _largest_aligned_divisor(hw, 128, hw // 2) or hw

    grid = (n // tile_n, c // tile_c, hw // tile_hw)

    # ---- pallas_call ---------------------------------------------------------
    x_split = x_nchw.reshape(n, 2, c, hw)          # free, row-major reshape
    bias_2d = bias.reshape(c, 1)

    bytes_io = 2 * n * 2 * c * hw * itemsize       # one read + one write pass
    cost = pl.CostEstimate(
        flops=10 * n * c * hw,
        transcendentals=2 * n * c * hw,
        bytes_accessed=bytes_io,
    )

    out = pl.pallas_call(
        _modrelu_kernel,
        out_shape=jax.ShapeDtypeStruct((n, 2, c, hw), x_split.dtype),
        grid_spec=pltpu.PrefetchScalarGridSpec(
            num_scalar_prefetch=0,
            grid=grid,
            in_specs=[
                pl.BlockSpec((tile_n, 2, tile_c, tile_hw),
                             lambda i, k, j: (i, 0, k, j)),
                pl.BlockSpec((tile_c, 1), lambda i, k, j: (k, 0)),
            ],
            out_specs=pl.BlockSpec((tile_n, 2, tile_c, tile_hw),
                                   lambda i, k, j: (i, 0, k, j)),
        ),
        compiler_params=pltpu.CompilerParams(
            dimension_semantics=("parallel", "parallel", "parallel"),
            vmem_limit_bytes=vmem_limit,
        ),
        cost_estimate=cost,
    )(x_split, bias_2d)

    return out.reshape(n, c2, h, w)


def _modrelu_ref(x, bias):
    c = x.shape[1] // 2
    real = x[:, :c]
    imag = x[:, c:]
    magnitude = jnp.sqrt(real ** 2 + imag ** 2 + 1e-5)
    bias_view = bias.reshape(1, -1, 1, 1)
    scale = jnp.maximum(magnitude - bias_view, 0.0) / (magnitude + 1e-5)
    return jnp.concatenate([real * scale, imag * scale], axis=1)


if __name__ == "__main__":
    key = jax.random.PRNGKey(0)
    kx, kb = jax.random.split(key)

    N, C_half, H, W = 2, 4, 16, 16             # x has 2*C_half = 8 channels
    x = jax.random.normal(kx, (N, 2 * C_half, H, W), dtype=jnp.float32)
    # Module __init__ uses zeros; use a small deterministic bias so the ReLU
    # branch is actually exercised.
    bias = 0.1 * jax.random.normal(kb, (C_half,), dtype=jnp.float32)

    out = jax.block_until_ready(modrelu(x, bias))
    ref = _modrelu_ref(x, bias)

    assert out.shape == x.shape
    assert jnp.allclose(out, ref, atol=1e-5, rtol=1e-5), "mismatch vs reference"

    print("KERNEL_OK")
</pallas_src>

<mosaic_0001>
module attributes {stable_mosaic.version = 11 : i64} {
  func.func @_modrelu_kernel(%arg0: i32, %arg1: i32, %arg2: i32, %arg3: memref<1x2x4x256xf32, #tpu.memory_space<vmem>>, %arg4: memref<4x1xf32, #tpu.memory_space<vmem>>, %arg5: memref<1x2x4x256xf32, #tpu.memory_space<vmem>>) attributes {dimension_semantics = [#tpu.dimension_semantics<parallel>, #tpu.dimension_semantics<parallel>, #tpu.dimension_semantics<parallel>], iteration_bounds = array<i64: 2, 1, 1>, scalar_prefetch = 0 : i64, scratch_operands = 0 : i64, tpu.core_type = #tpu.core_type<tc>, window_params = [{transform_indices = @transform_0, window_bounds = array<i64: 1, 2, 4, 256>}, {transform_indices = @transform_1, window_bounds = array<i64: 4, 1>}, {transform_indices = @transform_2, window_bounds = array<i64: 1, 2, 4, 256>}]} {
    %c0 = arith.constant 0 : index
    %c0_0 = arith.constant 0 : index
    %c0_1 = arith.constant 0 : index
    %c0_2 = arith.constant 0 : index
    %0 = vector.load %arg3[%c0, %c0_0, %c0_1, %c0_2] : memref<1x2x4x256xf32, #tpu.memory_space<vmem>>, vector<1x1x4x256xf32>
    %1 = vector.shape_cast %0 : vector<1x1x4x256xf32> to vector<1x4x256xf32>
    %c0_3 = arith.constant 0 : index
    %c1 = arith.constant 1 : index
    %c0_4 = arith.constant 0 : index
    %c0_5 = arith.constant 0 : index
    %2 = vector.load %arg3[%c0_3, %c1, %c0_4, %c0_5] : memref<1x2x4x256xf32, #tpu.memory_space<vmem>>, vector<1x1x4x256xf32>
    %3 = vector.shape_cast %2 : vector<1x1x4x256xf32> to vector<1x4x256xf32>
    %4 = arith.mulf %1, %1 : vector<1x4x256xf32>
    %5 = arith.mulf %3, %3 : vector<1x4x256xf32>
    %6 = arith.addf %4, %5 : vector<1x4x256xf32>
    %cst = arith.constant 9.99999974E-6 : f32
    %7 = vector.broadcast %cst : f32 to vector<1x4x256xf32>
    %8 = arith.addf %6, %7 : vector<1x4x256xf32>
    %9 = math.sqrt %8 : vector<1x4x256xf32>
    %cst_6 = arith.constant 9.99999974E-6 : f32
    %10 = vector.broadcast %cst_6 : f32 to vector<1x4x256xf32>
    %11 = arith.addf %9, %10 : vector<1x4x256xf32>
    %12 = tpu.reciprocal %11 : vector<1x4x256xf32> -> vector<1x4x256xf32>
    %c0_7 = arith.constant 0 : index
    %c0_8 = arith.constant 0 : index
    %13 = vector.load %arg4[%c0_7, %c0_8] : memref<4x1xf32, #tpu.memory_space<vmem>>, vector<4x1xf32>
    %14 = vector.shape_cast %13 : vector<4x1xf32> to vector<1x4x1xf32>
    %15 = vector.broadcast %14 : vector<1x4x1xf32> to vector<1x4x256xf32>
    %16 = arith.subf %9, %15 : vector<1x4x256xf32>
    %cst_9 = arith.constant 0.000000e+00 : f32
    %17 = vector.broadcast %cst_9 : f32 to vector<1x4x256xf32>
    %18 = arith.maximumf %16, %17 : vector<1x4x256xf32>
    %19 = arith.mulf %18, %12 : vector<1x4x256xf32>
    %20 = arith.mulf %1, %19 : vector<1x4x256xf32>
    %c0_10 = arith.constant 0 : index
    %c0_11 = arith.constant 0 : index
    %c0_12 = arith.constant 0 : index
    %c0_13 = arith.constant 0 : index
    %21 = vector.load %arg5[%c0_10, %c0_11, %c0_12, %c0_13] : memref<1x2x4x256xf32, #tpu.memory_space<vmem>>, vector<1x1x4x256xf32>
    %22 = vector.shape_cast %21 : vector<1x1x4x256xf32> to vector<1x4x256xf32>
    %23 = vector.shape_cast %20 : vector<1x4x256xf32> to vector<1x1x4x256xf32>
    tpu.vector_store %arg5[%c0_10, %c0_11, %c0_12, %c0_13], %23 {strides = array<i32>} : memref<1x2x4x256xf32, #tpu.memory_space<vmem>>, vector<1x1x4x256xf32>,
    %24 = arith.mulf %3, %19 : vector<1x4x256xf32>
    %c0_14 = arith.constant 0 : index
    %c1_15 = arith.constant 1 : index
    %c0_16 = arith.constant 0 : index
    %c0_17 = arith.constant 0 : index
    %25 = vector.load %arg5[%c0_14, %c1_15, %c0_16, %c0_17] : memref<1x2x4x256xf32, #tpu.memory_space<vmem>>, vector<1x1x4x256xf32>
    %26 = vector.shape_cast %25 : vector<1x1x4x256xf32> to vector<1x4x256xf32>
    %27 = vector.shape_cast %24 : vector<1x4x256xf32> to vector<1x1x4x256xf32>
    tpu.vector_store %arg5[%c0_14, %c1_15, %c0_16, %c0_17], %27 {strides = array<i32>} : memref<1x2x4x256xf32, #tpu.memory_space<vmem>>, vector<1x1x4x256xf32>,
    return
  }
  func.func @transform_0(%arg0: i32, %arg1: i32, %arg2: i32) -> (i32, i32, i32, i32) {
    %c0_i32 = arith.constant 0 : i32
    %c0_i32_0 = arith.constant 0 : i32
    return %arg0, %c0_i32, %arg1, %arg2 : i32, i32, i32, i32
  }
  func.func @transform_1(%arg0: i32, %arg1: i32, %arg2: i32) -> (i32, i32) {
    %c0_i32 = arith.constant 0 : i32
    %c0_i32_0 = arith.constant 0 : i32
    return %arg1, %c0_i32 : i32, i32
  }
  func.func @transform_2(%arg0: i32, %arg1: i32, %arg2: i32) -> (i32, i32, i32, i32) {
    %c0_i32 = arith.constant 0 : i32
    %c0_i32_0 = arith.constant 0 : i32
    return %arg0, %c0_i32, %arg1, %arg2 : i32, i32, i32, i32
  }
}

</mosaic_0001>

<bundles_post_ra>
// kernel: tpu_custom_call.1
= control target key start
LH: loop header
LB: loop body
LE: loop exit
PB: predicated region body
PF: predicated region fallthrough
CT: control target
= control target key end

     0   :  { %7 = vsyncpa [#allocation3], 0  ;;  %s788_s0 = inlined_call_operand.hbm [shape: f32[2,2,4,256], index: 0, kind: input, shape index: {}]   ;;  %s789_s1 = inlined_call_operand.vmem [shape: f32[4,1], index: 1, kind: input, shape index: {}]   ;;  %s790_s2 = inlined_call_operand.hbm [shape: f32[2,2,4,256], index: 2, kind: output, shape index: {}]  }
   0x1   :  { %9 = vsyncpa [#allocation3 + $0x1], 0 }
   0x2   :  { %10 = vsyncpa [#allocation4], 0 }
   0x3   :  { %12 = vsyncpa [#allocation4 + $0x1], 0  ;;  %s606_s9 = smov 0   ;;  %s608_s10 = smov 0  }
   0x4   :  { %s610_s11 = smov 0   ;;  %s612_s12 = smov 0  }
   0x5   :  { %s614_s13 = smov 0   ;;  %s616_s14 = smov 0  }
   0x6 LB: > { %s376_s15 = sadd.s32 4294967295, %s581_s14   ;;  %s377_s16 = sadd.s32 4294967294, %s581_s14   ;;  %s581_s14 = sphi %s616_s14, %s18_s14   ;;  %s577_s13 = sphi %s614_s13, %s805_s13   ;;  %s573_s12 = sphi %s612_s12, %s804_s12   ;;  %s569_s11 = sphi %s610_s11, %s803_s11   ;;  %s565_s10 = sphi %s608_s10, %s802_s10   ;;  %s561_s9 = sphi %s606_s9, %s801_s9  }
   0x7   : > { %s37_s17 = sadd.s32 1, %s577_s13  ;;  %s48_s18 = sadd.s32 1, %s569_s11 }
   0x8   : > { %p39_p0 = scmp.ge.s32.totalorder %s37_s17, 2  ;;  %p55_p1 = scmp.ne.s32.totalorder %s569_s11, %s565_s10 }
   0x9   : > { %p56_p2 = scmp.eq.s32.totalorder %s581_s14, 0  ;;  %p61_p3 = scmp.ne.s32.totalorder %s565_s10, %s561_s9 }
   0xa   : > { %s807_s17 = smov (%p39_p0, %s37_s17), 0  ;;  %p62_p5 = scmp.eq.s32.totalorder %s376_s15, 0 }
   0xb   : > { %p647_p4 = por %p56_p2, %p55_p1  ;;  %s41_s20 = ssub.s32 %s577_s13, %s807_s17 }
   0xc   : > { %p115_p6 = scmp.eq.s32.totalorder %s376_s15, 1  ;;  %p46_p7 = scmp.eq.s32.totalorder %s41_s20, 0 }
   0xd   : > { %p653_p8 = por %p62_p5, %p61_p3  ;;  %p121_p10 = scmp.eq.s32.totalorder %s377_s16, 1 }
   0xe   : > { %p657_p9 = por %p115_p6, %p55_p1  ;;  %p408_p13 = scmp.lt.s32.totalorder %s581_s14, 2 }
   0xf   : > { %s662_s23 = scalar_select %p46_p7, %s569_s11, %s48_s18  }
  0x10   : > { %s794_s22 = scalar_select %p657_p9, 1, 0 }
  0x11   : > { %p664_p11 = por %p121_p10, %p61_p3  ;;  %s148_s25 = sand.u32 1, %s569_s11  }
  0x12   : > { %s381_s26 = sshll.u32 %s148_s25, 4  ;;  %s394_s27 = sshll.u32 %s577_s13, 8 }
  0x13   : > { %s795_s24 = scalar_select %p664_p11, 1, 0 }
  0x14   : > { %s675_s30 = scalar_lea.hbm %s788_s0, %s394_s27  ;;  %s152_s3 = scalar_lea.vmem [#allocation2], %s381_s26 }
  0x15   : > { %s163_s4 = sshll.u32 %s152_s3, 4  ;;  %p681_p0 = pnand %p408_p13, %p647_p4  ;;  %s677_s4 = int_to_ptr.vmem [resolvable:$true] %s163_s4 }
  0x16   : > { %s686_s6 = scalar_lea.sflag [#allocation3], %s148_s25  ;;  %s469_s7 = scalar_lea.hbm %s675_s30, 256 }
  0x17   : > { %p470_p2 = scmp.ne.s32.totalorder %s675_s30, %s469_s7  ;;  %p471_p3 = pneg %p681_p0 }
  0x18   : > { %s474_s16 = scalar_lea.hbm %s788_s0, 512  ;;  %p475_p4 = scmp.lt.u32.totalorder %s675_s30, %s788_s0 }
  0x19   : > { %p472_p5 = pnand %p471_p3, %p470_p2  ;;  %p476_p7 = scmp.lt.u32.totalorder %s474_s16, %s469_s7 }
  0x1a   : > { %p478_p13 = scmp.lt.u32.totalorder %s469_s7, %s675_s30 }
  0x1b   : > { %p473_p6 = pneg %p472_p5  ;;  %p477_p10 = por %p476_p7, %p475_p4 }
  0x1d   : > { %p479_p12 = por %p478_p13, %p477_p10 }
  0x1f   : > { %p480_p1 = pnand %p479_p12, %p473_p6 }
  0x21   : > { %483 = shalt.err (!%p480_p1)
}
  0x22   : > { %s484_s20 = scalar_lea.vmem %s677_s4, 256  ;;  %s583_s25 = smov [#allocation2]  }
  0x23   : > { %p485_p2 = scmp.ne.s32.totalorder %s677_s4, %s484_s20  ;;  %s489_s26 = sshll.u32 %s583_s25, 4  ;;  %s490_s26 = int_to_ptr.vmem [resolvable:$false] %s489_s26 }
  0x24   : > { %s491_s27 = scalar_lea.vmem %s490_s26, 512  ;;  %p492_p9 = scmp.lt.s32.totalorder %s677_s4, %s490_s26 }
  0x25   : > { %p487_p5 = pnand %p485_p2, %p471_p3  ;;  %p493_p4 = scmp.lt.s32.totalorder %s491_s27, %s484_s20 }
  0x27   : > { %p488_p11 = pneg %p487_p5  ;;  %p494_p7 = por %p493_p4, %p492_p9 }
  0x29   : > { %p495_p10 = pnand %p494_p7, %p488_p11 }
  0x2b   : > { %498 = shalt.err (!%p495_p10)
}
  0x2c   : > { %s584_s28 = smov 128   ;;  %s585_s29 = smov 8  }
  0x2d   : > { %403 = dma.hbm_to_vmem [thread:$0]  (!%p681_p0), %s675_s30, 256, %s677_s4, %s686_s6, %s584_s28, %s584_s28, %s585_s29  }
  0x2e   : > { %p171_p12 = scmp.lt.s32.totalorder %s581_s14, 3  ;;  %p797_p1 = scmp.ge.s32.totalorder %s581_s14, 1 }
  0x30   : > { %p172_p3 = pnand %p797_p1, %p171_p12 }
  0x31   : > { %s718_s3 = sand.u32 (!%p172_p3), 1, %s565_s10  }
  0x32   : > { %175 = sbr.rel (%p172_p3) target bundleno = 213 (0xd5), region = 28  ;;  %s385_s7 = sshll.u32 (!%p172_p3), %s718_s3, 4 }
  0x33   : > { %s178_s8 = scalar_lea.sflag (!%p172_p3), [#allocation3], %s718_s3  ;;  %s181_s15 = scalar_lea.vmem (!%p172_p3), [#allocation2], %s385_s7 }
  0x39   : > { %552 = dma.done.wait (%p653_p8), %s178_s8, 256  }
  0x3a   : > { %554 = vsyncadd (%p653_p8), %s178_s8, 4294967040  ;;  %v586_v0 = vmov 0   ;;  %v228_v1 = vld [vmem:[%s789_s1] sm:$0xf]  ;;  %v387_v3 = vld [vmem:[%s181_s15 + $0x8] sm:$0xff]  ;;  %v236_v15 = vlaneseq  ;;  %s395_s21 = sshll.u32 %s573_s12, 8 }
  0x3b   : > { %464 = vset.pattern.permute.xlu0 %v586_v0  ;;  %v212_v2 = vld [vmem:[%s181_s15] sm:$0xff]  ;;  %v216_v5 = vmul.f32 %v387_v3, %v387_v3  ;;  %v587_v13 = vmov 839922192   ;;  %s205_s5 = scalar_lea.vmem [#allocation5], %s385_s7  ;;  %s737_s19 = scalar_lea.hbm %s790_s2, %s395_s21 }
  0x3c   : > { %231 = vperm.xlu0 %464, %v228_v1   ;;  %v215_v4 = vmul.f32 %v212_v2, %v212_v2  ;;  %v234_v14 = vunpack.c.l.s4 %v587_v13  ;;  %v237_v18 = vshrl.u32 %v236_v15, 7  ;;  %s267_s6 = sshll.u32 %s205_s5, 4  ;;  %s250_s20 = scalar_lea.sflag [#allocation4], %s718_s3  ;;  %s739_s6 = int_to_ptr.vmem [resolvable:$true] %s267_s6 }
  0x3d   : > { %s499_s12 = scalar_lea.vmem %s739_s6, 256  ;;  %p798_p9 = scmp.ne.s32.totalorder %s794_s22, 0 }
  0x3e   : > { %v217_v6 = vadd.f32 %v216_v5, %v215_v4  ;;  %v235_v17 = vunpack.c.0.s8 %v234_v14  ;;  %p500_p8 = scmp.ne.s32.totalorder %s739_s6, %s499_s12  ;;  %s588_s25 = smov [#allocation5]  }
  0x3f   : > { %s503_s26 = sshll.u32 %s588_s25, 4  ;;  %s504_s26 = int_to_ptr.vmem [resolvable:$false] %s503_s26 }
  0x40   : > { %v218_v7 = vadd.f32 1e-05, %v217_v6  ;;  %v238_v19 = vsub.s32 %v235_v17, %v237_v18  ;;  %p501_p11 = pnand %p500_p8, %p798_p9  ;;  %s505_s27 = scalar_lea.vmem %s504_s26, 512 }
  0x41   : > { %p506_p6 = scmp.lt.s32.totalorder %s739_s6, %s504_s26  ;;  %p507_p13 = scmp.lt.s32.totalorder %s505_s27, %s499_s12 }
  0x42   : > { %465 = vrsqrt.f32 %v218_v7  ;;  %vm221_vm0 = vcmp.eq.f32.partialorder %v218_v7, inf  ;;  %v224_v10 = vand.u32 2147483648, %v218_v7  ;;  %vm223_vm1 = vcmp.eq.f32.partialorder %v218_v7, 0.0  ;;  %p502_p0 = pneg %p501_p11 }
  0x43   : > { %p508_p2 = por %p507_p13, %p506_p6 }
  0x45   : > { %p509_p5 = pnand %p508_p2, %p502_p0 }
  0x4c   : > { %v466_v8 = vpop.eup %465 }
  0x4d   : > { %v220_v9 = vmul.f32 %v466_v8, %v218_v7 }
  0x4f   : > { %v222_v11 = vsel %vm221_vm0, %v218_v7, %v220_v9 }
  0x50   : > { %v225_v12 = vsel %vm223_vm1, %v224_v10, %v222_v11 }
  0x51   : > { %v226_v16 = vadd.f32 1e-05, %v225_v12 }
  0x53   : > { %467 = vrcp.f32 %v226_v16 }
  0x5d   : > { %v468_v23 = vpop.eup %467 }
  0xbb   : > { %v232_v20 = vpop.permute.xlu0 %231 }
  0xbc   : > { %v239_v21 = vrot.slane %v232_v20, %v238_v19 }
  0xbe   : > { %v241_v22 = vsub.f32 %v225_v12, %v239_v21 }
  0xc0   : > { %v242_v24 = vmax.f32 %v241_v22, 0.0 }
  0xc2   : > { %v243_v25 = vmul.f32 %v468_v23, %v242_v24 }
  0xc4   : > { %v244_v26 = vmul.f32 %v243_v25, %v212_v2  ;;  %v246_v27 = vmul.f32 %v387_v3, %v243_v25 }
  0xc6   : > { %245 = vst [vmem:[%s205_s5] sm:$0xff] %v244_v26  ;;  %388 = vst [vmem:[%s205_s5 + $0x8] sm:$0xff] %v246_v27 }
  0xc7   : > { %512 = shalt.err (!%p509_p5)
}
  0xc8   : > { %s513_s28 = scalar_lea.hbm %s737_s19, 256  ;;  %s517_s8 = scalar_lea.hbm %s790_s2, 512 }
  0xc9   : > { %p514_p4 = scmp.ne.s32.totalorder %s737_s19, %s513_s28  ;;  %p518_p12 = scmp.lt.u32.totalorder %s737_s19, %s790_s2 }
  0xca   : > { %p519_p1 = scmp.lt.u32.totalorder %s517_s8, %s513_s28  ;;  %p521_p8 = scmp.lt.u32.totalorder %s513_s28, %s737_s19 }
  0xcb   : > { %p515_p7 = pnand %p514_p4, %p798_p9 }
  0xcc   : > { %p520_p3 = por %p519_p1, %p518_p12 }
  0xcd   : > { %p516_p10 = pneg %p515_p7 }
  0xce   : > { %p522_p11 = por %p521_p8, %p520_p3 }
  0xd0   : > { %p523_p0 = pnand %p522_p11, %p516_p10 }
  0xd2   : > { %526 = shalt.err (!%p523_p0)
}
  0xd3   : > { %s589_s4 = smov 128   ;;  %s590_s21 = smov 8  }
  0xd4   : > { %398 = dma.vmem_to_hbm [thread:$0]  (%p798_p9), %s739_s6, 256, %s737_s19, %s250_s20, %s589_s4, %s589_s4, %s590_s21  }
  0xd5 PF: > { %s282_s5 = sand.u32 1, %s561_s9   ;;  %p799_p6 = scmp.ne.s32.totalorder %s795_s24, 0 }
  0xd6   : > { %p800_p13 = scmp.ge.s32.totalorder %s581_s14, 2  ;;  %s283_s16 = scalar_lea.sflag [#allocation4], %s282_s5 }
  0xd8   : > { %p405_p2 = pnand %p800_p13, %p799_p6 }
  0xda   : > { %556 = dma.done.wait (!%p405_p2), %s283_s16, 256  }
  0xdb   : > { %558 = vsyncadd (!%p405_p2), %s283_s16, 4294967040  ;;  %s18_s14 = sadd.s32 1, %s581_s14   ;;  %s801_s9 = smov %s565_s10 }
  0xdc   : > { %p15_p5 = scmp.ge.s32.totalorder %s18_s14, 4   ;;  %s802_s10 = smov %s569_s11 }
  0xdd   : > { %s803_s11 = smov %s662_s23  ;;  %s804_s12 = smov %s577_s13 }
  0xde   : > { %s805_s13 = smov %s807_s17  ;;  %17 = sbr.rel (!%p15_p5) target bundleno = 6 (0x6), region = 78 }
  0xe5   :  { %288 = vsyncpa [#allocation3], 1 }
  0xe6   :  { %290 = vsyncpa [#allocation3 + $0x1], 1 }
  0xe7   :  { %291 = vsyncpa [#allocation4], 1 }
  0xe8   :  { %293 = vsyncpa [#allocation4 + $0x1], 1 }

</bundles_post_ra>
